<compile_context>
chip_gen: v5e
topology: v5e:2x2
jax: 0.10.0
libtpu: 0.0.40
codegen_flags: <defaults>
</compile_context>

<pallas_src>
import functools

import jax
import jax.numpy as jnp
import numpy as np
from jax import lax
from jax.experimental import pallas as pl
from jax.experimental.pallas import tpu as pltpu

BN_EPS = 1e-5


def _round_up(x, m):
    return (x + m - 1) // m * m


# ----------------------------------------------------------------------------
# Kernel: one (stage, batch-tile) grid step = one linear layer on one tile.
# ----------------------------------------------------------------------------
def _mplp_stage_kernel(x_ref, w_ref, p_ref,              # inputs
                       y_ref, act_ref,                   # outputs (ANY / HBM)
                       stage_in, stage_out,              # VMEM staging scratch
                       mean_ref, m2_ref,                 # Welford accumulators
                       scale_ref, shift_ref,             # finalized BN scale/shift
                       copy_sem,                         # DMA semaphore
                       *, n_rows, tile_n, num_stages,
                       branch_last_stage, final_first_stage, relu_last):
    s = pl.program_id(0)                 # stage        (outer, sequential)
    t = pl.program_id(1)                 # batch tile   (inner, sequential)
    last_stage = num_stages - 1

    def _copy(src, dst):
        cp = pltpu.make_async_copy(src, dst, copy_sem.at[0])
        cp.start()
        cp.wait()

    # -- once per stage: finalize previous stage's BatchNorm statistics into a
    #    fused (scale, shift) pair, then reset the accumulators.
    @pl.when(t == 0)
    def _():
        var = jnp.maximum(m2_ref[...] / float(n_rows), 0.0)
        rstd = lax.rsqrt(var + BN_EPS)
        scale = p_ref[0, 1:2, :] * rstd                  # gamma_{s-1} * rstd
        scale_ref[...] = scale
        shift_ref[...] = p_ref[0, 2:3, :] - mean_ref[...] * scale
        mean_ref[...] = jnp.zeros_like(mean_ref)
        m2_ref[...] = jnp.zeros_like(m2_ref)

    # -- fetch this tile's input activation (raw packed input at stage 0,
    #    otherwise the previous stage's ping-pong HBM slot).
    row0 = pl.multiple_of(t * tile_n, tile_n)

    @pl.when(s == 0)
    def _():
        _copy(x_ref.at[pl.ds(row0, tile_n), :], stage_in)

    @pl.when(s > 0)
    def _():
        _copy(act_ref.at[(s - 1) % 2, pl.ds(row0, tile_n), :], stage_in)

    # -- previous layer's BatchNorm (training-mode batch statistics), fp32.
    xf = stage_in[...].astype(jnp.float32)
    bn = xf * scale_ref[...] + shift_ref[...]
    if relu_last:                                        # x = relu(bn(lin(x)))
        bn = jnp.maximum(bn, 0.0)
    do_in_bn = jnp.logical_and(s != 0, s != final_first_stage)
    xin = jnp.where(do_in_bn, bn, xf)

    # -- linear layer on the MXU (bf16 x bf16 -> fp32 accumulate).
    z = jnp.dot(xin.astype(w_ref.dtype), w_ref[0],
                preferred_element_type=jnp.float32) + p_ref[0, 0:1, :]

    # -- post-linear ReLU.
    if relu_last:
        do_relu = s == branch_last_stage                 # only the post-concat relu
    else:
        do_relu = s != last_stage
    a = jnp.where(do_relu, jnp.maximum(z, 0.0), z)

    # -- accumulate BatchNorm statistics across batch tiles (Chan/Welford
    #    combine; padded batch rows masked out of the statistics).
    rows = lax.broadcasted_iota(jnp.int32, a.shape, 0) + row0
    vmask = (rows < n_rows).astype(jnp.float32)
    n_a = (t * tile_n).astype(jnp.float32)
    n_b = jnp.minimum(n_rows - t * tile_n, tile_n).astype(jnp.float32)
    mean_b = jnp.sum(a * vmask, axis=0, keepdims=True) / n_b
    diff = (a - mean_b) * vmask
    m2_b = jnp.sum(diff * diff, axis=0, keepdims=True)
    n_ab = n_a + n_b
    delta = mean_b - mean_ref[...]
    mean_ref[...] = mean_ref[...] + delta * (n_b / n_ab)
    m2_ref[...] = m2_ref[...] + m2_b + (delta * delta) * (n_a * n_b / n_ab)

    # -- write the (pre-BatchNorm) activation or the final output tile
    #    (lane-dense: full 128-padded width).
    stage_out[...] = a.astype(stage_out.dtype)

    @pl.when(s < last_stage)
    def _():
        _copy(stage_out, act_ref.at[s % 2, pl.ds(row0, tile_n), :])

    @pl.when(s == last_stage)
    def _():
        _copy(stage_out, y_ref.at[pl.ds(row0, tile_n), :])


# ----------------------------------------------------------------------------
# Host-side packing: block-diagonal branch weights + padded stage slabs.
# ----------------------------------------------------------------------------
def _pack_mplp(xs, params, tile_n, compute_dtype):
    L = len(params["branches"][0]["weights"])
    assert L >= 2, "num_layers must be >= 2"
    N = int(xs[0].shape[0])
    fp = params["final"]
    branches = params["branches"]

    in_dims = [int(x.shape[1]) for x in xs]
    hid_dims = [int(bp["weights"][0].shape[1]) for bp in branches]
    mlp_hidden = int(fp["weights"][0].shape[1])
    out_c = int(fp["weights"][-1].shape[1])

    widths = [sum(in_dims)] + [sum(hid_dims)] * L + [mlp_hidden] * (L - 1) + [out_c]
    S = 2 * L
    D = max(128, _round_up(max(widths), 128))

    T = -(-N // tile_n)                       # cdiv
    N_pad = T * tile_n

    W_stack = np.zeros((S, D, D), np.float32)
    P_stack = np.zeros((S, 3, D), np.float32)     # rows: [bias_s, gamma_{s-1}, beta_{s-1}]

    def put_block_diag(s, mats):
        r = c = 0
        for m in mats:
            m = np.asarray(m, np.float32)
            W_stack[s, r:r + m.shape[0], c:c + m.shape[1]] = m
            r += m.shape[0]
            c += m.shape[1]

    def put_vec(s, row, vecs):
        v = np.concatenate([np.asarray(x, np.float32).reshape(-1) for x in vecs])
        P_stack[s, row, :v.shape[0]] = v

    # branch stages 0..L-1 (block-diagonal over branches)
    for l in range(L):
        put_block_diag(l, [bp["weights"][l] for bp in branches])
        put_vec(l, 0, [bp["biases"][l] for bp in branches])
    # branch BatchNorm params (after stages 0..L-2) are applied by stages 1..L-1
    for l in range(L - 1):
        put_vec(l + 1, 1, [bp["gammas"][l] for bp in branches])
        put_vec(l + 1, 2, [bp["betas"][l] for bp in branches])
    # final-MLP stages L..2L-1 (dense)
    for l in range(L):
        s = L + l
        w = np.asarray(fp["weights"][l], np.float32)
        W_stack[s, :w.shape[0], :w.shape[1]] = w
        put_vec(s, 0, [fp["biases"][l]])
    # final-MLP BatchNorm params (after stages L..2L-2) applied by stages L+1..2L-1
    for l in range(L - 1):
        put_vec(L + l + 1, 1, [fp["gammas"][l]])
        put_vec(L + l + 1, 2, [fp["betas"][l]])

    # packed + padded input (concat of xs along the feature axis)
    x_cat = np.zeros((N_pad, D), np.float32)
    col = 0
    for x in xs:
        x = np.asarray(x, np.float32)
        x_cat[:N, col:col + x.shape[1]] = x
        col += x.shape[1]

    return dict(
        x=jnp.asarray(x_cat, compute_dtype),
        w=jnp.asarray(W_stack, compute_dtype),
        p=jnp.asarray(P_stack, jnp.float32),
        S=S, D=D, L=L, T=T, N=N, N_pad=N_pad, out_c=out_c)


# ----------------------------------------------------------------------------
# Wrapper: one pallas_call over grid = (stage, batch_tile).
# ----------------------------------------------------------------------------
def mplp_forward(xs, params, *, relu_last=False, tile_n=None,
                 compute_dtype=jnp.bfloat16):
    N = int(xs[0].shape[0])
    if tile_n is None:
        # Production sizing: 512-1024 rows, bounded by the per-generation VMEM
        # budget (v7x only has 64 MiB physical / 32 MiB default scoped).
        tile_n = min(512, _round_up(N, 8))
    assert tile_n % 8 == 0

    pk = _pack_mplp(xs, params, tile_n, compute_dtype)
    S, D, T, N_pad, out_c = pk["S"], pk["D"], pk["T"], pk["N_pad"], pk["out_c"]
    itemsize = jnp.dtype(compute_dtype).itemsize

    kernel = functools.partial(
        _mplp_stage_kernel,
        n_rows=N, tile_n=tile_n, num_stages=S,
        branch_last_stage=pk["L"] - 1, final_first_stage=pk["L"],
        relu_last=relu_last)

    # Explicit VMEM budget: double-buffered weight/param blocks + staging
    # scratch + stat scratch, with headroom (cap well under v7x's 64 MiB).
    vmem_need = (2 * D * D * itemsize + 2 * 3 * D * 4
                 + 2 * tile_n * D * itemsize + 6 * D * 4)
    vmem_limit = int(min(32 * 1024 * 1024, max(16 * 1024 * 1024, 4 * vmem_need)))

    flops = 2 * S * N_pad * D * D
    bytes_accessed = int(
        pk["x"].size * itemsize + pk["w"].size * itemsize + pk["p"].size * 4
        + 2 * (S - 1) * N_pad * D * itemsize          # ping-pong activation traffic
        + N_pad * D * itemsize)                       # output

    y_pad, _ = pl.pallas_call(
        kernel,
        out_shape=(
            jax.ShapeDtypeStruct((N_pad, D), compute_dtype),      # padded output
            jax.ShapeDtypeStruct((2, N_pad, D), compute_dtype),   # ping-pong acts
        ),
        grid=(S, T),
        in_specs=[
            pl.BlockSpec(memory_space=pl.ANY),                    # packed input (HBM)
            pl.BlockSpec((1, D, D), lambda s, t: (s, 0, 0)),      # weight slab
            pl.BlockSpec((1, 3, D), lambda s, t: (s, 0, 0)),      # bias/gamma/beta slab
        ],
        out_specs=(
            pl.BlockSpec(memory_space=pl.ANY),
            pl.BlockSpec(memory_space=pl.ANY),
        ),
        scratch_shapes=[
            pltpu.VMEM((tile_n, D), compute_dtype),               # stage_in
            pltpu.VMEM((tile_n, D), compute_dtype),               # stage_out
            pltpu.VMEM((1, D), jnp.float32),                      # mean accumulator
            pltpu.VMEM((1, D), jnp.float32),                      # M2 accumulator
            pltpu.VMEM((1, D), jnp.float32),                      # BN scale
            pltpu.VMEM((1, D), jnp.float32),                      # BN shift
            pltpu.SemaphoreType.DMA((1,)),
        ],
        compiler_params=pltpu.CompilerParams(
            dimension_semantics=("arbitrary", "arbitrary"),
            vmem_limit_bytes=vmem_limit),
        cost_estimate=pl.CostEstimate(flops=flops, transcendentals=S * D,
                                      bytes_accessed=bytes_accessed),
    )(pk["x"], pk["w"], pk["p"])

    return y_pad[:N, :out_c].astype(jnp.float32)


# ----------------------------------------------------------------------------
# Deterministic parameter init (synthetic; mirrors PyTorch shapes; W is (in,out))
# ----------------------------------------------------------------------------
def init_mlp_params(key, in_c, hid, out_c, num_layers):
    dims = [in_c] + [hid] * (num_layers - 1) + [out_c]
    weights, biases = [], []
    for i in range(num_layers):
        key, kw, kb = jax.random.split(key, 3)
        bound = 1.0 / np.sqrt(dims[i])
        weights.append(jax.random.uniform(
            kw, (dims[i], dims[i + 1]), jnp.float32, -bound, bound))
        biases.append(jax.random.uniform(
            kb, (1, dims[i + 1]), jnp.float32, -bound, bound))
    gammas = [jnp.ones((1, hid), jnp.float32) for _ in range(num_layers - 1)]
    betas = [jnp.zeros((1, hid), jnp.float32) for _ in range(num_layers - 1)]
    return key, dict(weights=weights, biases=biases, gammas=gammas, betas=betas)


def init_mplp_params(key, in_channels, hidden_channels, out_channels,
                     mlp_hidden, num_layers):
    branches = []
    tot_hidden = 0
    for i_c, h_c in zip(in_channels, hidden_channels):
        tot_hidden += h_c
        key, bp = init_mlp_params(key, i_c, h_c, h_c, num_layers)
        branches.append(bp)
    key, fp = init_mlp_params(key, tot_hidden, mlp_hidden, out_channels,
                              num_layers)
    return dict(branches=branches, final=fp)


# ----------------------------------------------------------------------------
# Pure-JAX fp32 reference (for the correctness check)
# ----------------------------------------------------------------------------
def _mlp_ref(x, p, relu_last=False):
    nl = len(p["weights"])
    hp = jax.lax.Precision.HIGHEST
    for i in range(nl - 1):
        z = jnp.dot(x, p["weights"][i], precision=hp) + p["biases"][i]
        if not relu_last:
            z = jnp.maximum(z, 0.0)
        mean = z.mean(0, keepdims=True)
        var = jnp.square(z - mean).mean(0, keepdims=True)
        z = (z - mean) / jnp.sqrt(var + BN_EPS) * p["gammas"][i] + p["betas"][i]
        if relu_last:
            z = jnp.maximum(z, 0.0)
        x = z
    return jnp.dot(x, p["weights"][-1], precision=hp) + p["biases"][-1]


def _mplp_ref(xs, params, relu_last=False):
    outs = [_mlp_ref(x, bp, relu_last) for x, bp in zip(xs, params["branches"])]
    cat = jnp.maximum(jnp.concatenate(outs, axis=-1), 0.0)
    return _mlp_ref(cat, params["final"], relu_last)


# ----------------------------------------------------------------------------
if __name__ == "__main__":
    # MPLP(in_channels=(16, 24), hidden_channels=(32, 16), out_channels=8,
    #      mlp_hidden=32, num_layers=3), batch=200.
    in_channels = (16, 24)
    hidden_channels = (32, 16)
    out_channels = 8
    mlp_hidden = 32
    num_layers = 3
    batch = 200
    tile_n = 64      # 4 batch tiles (last one partial): exercises cross-tile
                     # BatchNorm accumulation + padded-row masking.

    key = jax.random.PRNGKey(0)
    key, kx0, kx1 = jax.random.split(key, 3)
    xs = [
        jax.random.normal(kx0, (batch, in_channels[0]), jnp.float32),
        jax.random.normal(kx1, (batch, in_channels[1]), jnp.float32),
    ]
    params = init_mplp_params(key, in_channels, hidden_channels, out_channels,
                              mlp_hidden, num_layers)

    ref = _mplp_ref(xs, params)

    # fp32 run: tight numerical check of the fused/tiled kernel structure.
    out_f32 = jax.block_until_ready(
        mplp_forward(xs, params, tile_n=tile_n, compute_dtype=jnp.float32))
    np.testing.assert_allclose(np.asarray(out_f32), np.asarray(ref),
                               rtol=2e-3, atol=2e-3)

    # bf16 run: the performance configuration (bf16 MXU matmuls, fp32 BN math).
    out_bf16 = jax.block_until_ready(
        mplp_forward(xs, params, tile_n=tile_n, compute_dtype=jnp.bfloat16))
    np.testing.assert_allclose(np.asarray(out_bf16), np.asarray(ref),
                               rtol=1e-1, atol=1e-1)

    assert out_bf16.shape == (batch, out_channels)
    print("KERNEL_OK")
</pallas_src>

<mosaic_0001>
module attributes {stable_mosaic.version = 11 : i64} {
  func.func @_mplp_stage_kernel(%arg0: i32, %arg1: i32, %arg2: memref<256x128xf32, #tpu.memory_space<any>>, %arg3: memref<1x128x128xf32, #tpu.memory_space<vmem>>, %arg4: memref<1x3x128xf32, #tpu.memory_space<vmem>>, %arg5: memref<256x128xf32, #tpu.memory_space<any>>, %arg6: memref<2x256x128xf32, #tpu.memory_space<any>>, %arg7: memref<64x128xf32, #tpu.memory_space<vmem>>, %arg8: memref<64x128xf32, #tpu.memory_space<vmem>>, %arg9: memref<1x128xf32, #tpu.memory_space<vmem>>, %arg10: memref<1x128xf32, #tpu.memory_space<vmem>>, %arg11: memref<1x128xf32, #tpu.memory_space<vmem>>, %arg12: memref<1x128xf32, #tpu.memory_space<vmem>>, %arg13: memref<1x!tpu.dma_semaphore, #tpu.memory_space<semaphore_mem>>) attributes {dimension_semantics = [#tpu.dimension_semantics<arbitrary>, #tpu.dimension_semantics<arbitrary>], iteration_bounds = array<i64: 6, 4>, scalar_prefetch = 0 : i64, scratch_operands = 7 : i64, tpu.core_type = #tpu.core_type<tc>, window_params = [{}, {transform_indices = @transform_1, window_bounds = array<i64: 1, 128, 128>}, {transform_indices = @transform_2, window_bounds = array<i64: 1, 3, 128>}, {}, {}]} {
    %c0_i32 = arith.constant 0 : i32
    %0 = arith.cmpi eq, %arg1, %c0_i32 : i32
    %1 = arith.extui %0 : i1 to i32
    %c0_i32_0 = arith.constant 0 : i32
    %2 = arith.cmpi ne, %1, %c0_i32_0 : i32
    scf.if %2 {
      %c0_40 = arith.constant 0 : index
      %c0_41 = arith.constant 0 : index
      %82 = vector.load %arg10[%c0_40, %c0_41] : memref<1x128xf32, #tpu.memory_space<vmem>>, vector<1x128xf32>
      %cst_42 = arith.constant 2.000000e+02 : f32
      %83 = vector.broadcast %cst_42 : f32 to vector<1x128xf32>
      %84 = arith.divf %82, %83 : vector<1x128xf32>
      %cst_43 = arith.constant 0.000000e+00 : f32
      %85 = vector.broadcast %cst_43 : f32 to vector<1x128xf32>
      %86 = arith.maximumf %84, %85 : vector<1x128xf32>
      %cst_44 = arith.constant 9.99999974E-6 : f32
      %87 = vector.broadcast %cst_44 : f32 to vector<1x128xf32>
      %88 = arith.addf %86, %87 : vector<1x128xf32>
      %89 = math.rsqrt %88 : vector<1x128xf32>
      %c0_45 = arith.constant 0 : index
      %c1 = arith.constant 1 : index
      %c0_46 = arith.constant 0 : index
      %90 = vector.load %arg4[%c0_45, %c1, %c0_46] : memref<1x3x128xf32, #tpu.memory_space<vmem>>, vector<1x1x128xf32>
      %91 = vector.shape_cast %90 : vector<1x1x128xf32> to vector<1x128xf32>
      %92 = arith.mulf %91, %89 : vector<1x128xf32>
      %c0_47 = arith.constant 0 : index
      %c0_48 = arith.constant 0 : index
      %93 = vector.load %arg11[%c0_47, %c0_48] : memref<1x128xf32, #tpu.memory_space<vmem>>, vector<1x128xf32>
      tpu.vector_store %arg11[%c0_47, %c0_48], %92 {strides = array<i32>} : memref<1x128xf32, #tpu.memory_space<vmem>>, vector<1x128xf32>,
      %c0_49 = arith.constant 0 : index
      %c2 = arith.constant 2 : index
      %c0_50 = arith.constant 0 : index
      %94 = vector.load %arg4[%c0_49, %c2, %c0_50] : memref<1x3x128xf32, #tpu.memory_space<vmem>>, vector<1x1x128xf32>
      %95 = vector.shape_cast %94 : vector<1x1x128xf32> to vector<1x128xf32>
      %c0_51 = arith.constant 0 : index
      %c0_52 = arith.constant 0 : index
      %96 = vector.load %arg9[%c0_51, %c0_52] : memref<1x128xf32, #tpu.memory_space<vmem>>, vector<1x128xf32>
      %97 = arith.mulf %96, %92 : vector<1x128xf32>
      %98 = arith.subf %95, %97 : vector<1x128xf32>
      %c0_53 = arith.constant 0 : index
      %c0_54 = arith.constant 0 : index
      %99 = vector.load %arg12[%c0_53, %c0_54] : memref<1x128xf32, #tpu.memory_space<vmem>>, vector<1x128xf32>
      tpu.vector_store %arg12[%c0_53, %c0_54], %98 {strides = array<i32>} : memref<1x128xf32, #tpu.memory_space<vmem>>, vector<1x128xf32>,
      %cst_55 = arith.constant 0.000000e+00 : f32
      %100 = vector.broadcast %cst_55 : f32 to vector<1x128xf32>
      %c0_56 = arith.constant 0 : index
      %c0_57 = arith.constant 0 : index
      %101 = vector.load %arg9[%c0_56, %c0_57] : memref<1x128xf32, #tpu.memory_space<vmem>>, vector<1x128xf32>
      tpu.vector_store %arg9[%c0_56, %c0_57], %100 {strides = array<i32>} : memref<1x128xf32, #tpu.memory_space<vmem>>, vector<1x128xf32>,
      %cst_58 = arith.constant 0.000000e+00 : f32
      %102 = vector.broadcast %cst_58 : f32 to vector<1x128xf32>
      %c0_59 = arith.constant 0 : index
      %c0_60 = arith.constant 0 : index
      %103 = vector.load %arg10[%c0_59, %c0_60] : memref<1x128xf32, #tpu.memory_space<vmem>>, vector<1x128xf32>
      tpu.vector_store %arg10[%c0_59, %c0_60], %102 {strides = array<i32>} : memref<1x128xf32, #tpu.memory_space<vmem>>, vector<1x128xf32>,
    } else {
    }
    %c64_i32 = arith.constant 64 : i32
    %3 = arith.muli %arg1, %c64_i32 : i32
    %4 = tpu.assume_multiple %3, 64 : i32
    %c0_i32_1 = arith.constant 0 : i32
    %5 = arith.cmpi eq, %arg0, %c0_i32_1 : i32
    %6 = arith.extui %5 : i1 to i32
    %c0_i32_2 = arith.constant 0 : i32
    %7 = arith.cmpi ne, %6, %c0_i32_2 : i32
    scf.if %7 {
      %c0_i32_40 = arith.constant 0 : i32
      %c0_i32_41 = arith.constant 0 : i32
      %82 = tpu.memref_slice %arg2[%4, %c0_i32_41] : memref<256x128xf32, #tpu.memory_space<any>> -> memref<64x128xf32, #tpu.memory_space<any>>
      %83 = tpu.memref_slice %arg13[%c0_i32_40] : memref<1x!tpu.dma_semaphore, #tpu.memory_space<semaphore_mem>> -> memref<1x!tpu.dma_semaphore, #tpu.memory_space<semaphore_mem>>
      %84 = tpu.memref_squeeze %83 : memref<1x!tpu.dma_semaphore, #tpu.memory_space<semaphore_mem>> -> memref<!tpu.dma_semaphore, #tpu.memory_space<semaphore_mem>>
      tpu.enqueue_dma source(%82 : memref<64x128xf32, #tpu.memory_space<any>>) target(%arg7 : memref<64x128xf32, #tpu.memory_space<vmem>>) target_semaphore(%84 : memref<!tpu.dma_semaphore, #tpu.memory_space<semaphore_mem>>)
      %c0_i32_42 = arith.constant 0 : i32
      %c0_i32_43 = arith.constant 0 : i32
      %85 = tpu.memref_slice %arg2[%4, %c0_i32_43] : memref<256x128xf32, #tpu.memory_space<any>> -> memref<64x128xf32, #tpu.memory_space<any>>
      %86 = tpu.memref_slice %arg13[%c0_i32_42] : memref<1x!tpu.dma_semaphore, #tpu.memory_space<semaphore_mem>> -> memref<1x!tpu.dma_semaphore, #tpu.memory_space<semaphore_mem>>
      %87 = tpu.memref_squeeze %86 : memref<1x!tpu.dma_semaphore, #tpu.memory_space<semaphore_mem>> -> memref<!tpu.dma_semaphore, #tpu.memory_space<semaphore_mem>>
      tpu.wait_dma2 semaphore(%87 : memref<!tpu.dma_semaphore, #tpu.memory_space<semaphore_mem>>) src(%85 : memref<64x128xf32, #tpu.memory_space<any>>) dst(%arg7 : memref<64x128xf32, #tpu.memory_space<vmem>>)
    } else {
    }
    %c0_i32_3 = arith.constant 0 : i32
    %8 = arith.cmpi sgt, %arg0, %c0_i32_3 : i32
    %9 = arith.extui %8 : i1 to i32
    %c0_i32_4 = arith.constant 0 : i32
    %10 = arith.cmpi ne, %9, %c0_i32_4 : i32
    scf.if %10 {
      %c1_i32 = arith.constant 1 : i32
      %82 = arith.subi %arg0, %c1_i32 : i32
      %c2_i32 = arith.constant 2 : i32
      %c0_i32_40 = arith.constant 0 : i32
      %83 = arith.cmpi eq, %c2_i32, %c0_i32_40 : i32
      %c1_i32_41 = arith.constant 1 : i32
      %84 = arith.select %83, %c1_i32_41, %c2_i32 : i32
      %85 = arith.remsi %82, %84 : i32
      %c0_i32_42 = arith.constant 0 : i32
      %86 = arith.cmpi ne, %85, %c0_i32_42 : i32
      %c0_i32_43 = arith.constant 0 : i32
      %87 = arith.cmpi slt, %85, %c0_i32_43 : i32
      %c0_i32_44 = arith.constant 0 : i32
      %88 = arith.cmpi slt, %84, %c0_i32_44 : i32
      %89 = arith.xori %87, %88 : i1
      %90 = arith.andi %89, %86 : i1
      %91 = arith.addi %85, %84 : i32
      %92 = arith.select %90, %91, %85 : i32
      %c0_i32_45 = arith.constant 0 : i32
      %c0_i32_46 = arith.constant 0 : i32
      %93 = tpu.memref_slice %arg6[%92, %4, %c0_i32_46] : memref<2x256x128xf32, #tpu.memory_space<any>> -> memref<1x64x128xf32, #tpu.memory_space<any>>
      %94 = tpu.memref_squeeze %93 : memref<1x64x128xf32, #tpu.memory_space<any>> -> memref<64x128xf32, #tpu.memory_space<any>>
      %95 = tpu.memref_slice %arg13[%c0_i32_45] : memref<1x!tpu.dma_semaphore, #tpu.memory_space<semaphore_mem>> -> memref<1x!tpu.dma_semaphore, #tpu.memory_space<semaphore_mem>>
      %96 = tpu.memref_squeeze %95 : memref<1x!tpu.dma_semaphore, #tpu.memory_space<semaphore_mem>> -> memref<!tpu.dma_semaphore, #tpu.memory_space<semaphore_mem>>
      tpu.enqueue_dma source(%94 : memref<64x128xf32, #tpu.memory_space<any>>) target(%arg7 : memref<64x128xf32, #tpu.memory_space<vmem>>) target_semaphore(%96 : memref<!tpu.dma_semaphore, #tpu.memory_space<semaphore_mem>>)
      %c0_i32_47 = arith.constant 0 : i32
      %c0_i32_48 = arith.constant 0 : i32
      %97 = tpu.memref_slice %arg6[%92, %4, %c0_i32_48] : memref<2x256x128xf32, #tpu.memory_space<any>> -> memref<1x64x128xf32, #tpu.memory_space<any>>
      %98 = tpu.memref_squeeze %97 : memref<1x64x128xf32, #tpu.memory_space<any>> -> memref<64x128xf32, #tpu.memory_space<any>>
      %99 = tpu.memref_slice %arg13[%c0_i32_47] : memref<1x!tpu.dma_semaphore, #tpu.memory_space<semaphore_mem>> -> memref<1x!tpu.dma_semaphore, #tpu.memory_space<semaphore_mem>>
      %100 = tpu.memref_squeeze %99 : memref<1x!tpu.dma_semaphore, #tpu.memory_space<semaphore_mem>> -> memref<!tpu.dma_semaphore, #tpu.memory_space<semaphore_mem>>
      tpu.wait_dma2 semaphore(%100 : memref<!tpu.dma_semaphore, #tpu.memory_space<semaphore_mem>>) src(%98 : memref<64x128xf32, #tpu.memory_space<any>>) dst(%arg7 : memref<64x128xf32, #tpu.memory_space<vmem>>)
    } else {
    }
    %c0 = arith.constant 0 : index
    %c0_5 = arith.constant 0 : index
    %11 = vector.load %arg7[%c0, %c0_5] : memref<64x128xf32, #tpu.memory_space<vmem>>, vector<64x128xf32>
    %c0_6 = arith.constant 0 : index
    %c0_7 = arith.constant 0 : index
    %12 = vector.load %arg11[%c0_6, %c0_7] : memref<1x128xf32, #tpu.memory_space<vmem>>, vector<1x128xf32>
    %13 = vector.broadcast %12 : vector<1x128xf32> to vector<64x128xf32>
    %14 = arith.mulf %11, %13 : vector<64x128xf32>
    %c0_8 = arith.constant 0 : index
    %c0_9 = arith.constant 0 : index
    %15 = vector.load %arg12[%c0_8, %c0_9] : memref<1x128xf32, #tpu.memory_space<vmem>>, vector<1x128xf32>
    %16 = vector.broadcast %15 : vector<1x128xf32> to vector<64x128xf32>
    %17 = arith.addf %14, %16 : vector<64x128xf32>
    %c0_i32_10 = arith.constant 0 : i32
    %18 = arith.cmpi ne, %arg0, %c0_i32_10 : i32
    %c3_i32 = arith.constant 3 : i32
    %19 = arith.cmpi ne, %arg0, %c3_i32 : i32
    %20 = arith.andi %18, %19 : i1
    %21 = arith.select %20, %17, %11 : vector<64x128xf32>
    %c0_11 = arith.constant 0 : index
    %c0_12 = arith.constant 0 : index
    %c0_13 = arith.constant 0 : index
    %22 = vector.load %arg3[%c0_11, %c0_12, %c0_13] : memref<1x128x128xf32, #tpu.memory_space<vmem>>, vector<1x128x128xf32>
    %23 = vector.shape_cast %22 : vector<1x128x128xf32> to vector<128x128xf32>
    %cst = arith.constant dense<0.000000e+00> : vector<64x128xf32>
    %24 = tpu.matmul %21, %23, %cst {dimension_numbers = #tpu.dot_dimension_numbers<[1], [0], [0], [1], [0, 0, 1, 1], [], []>} : vector<64x128xf32>, vector<128x128xf32>, vector<64x128xf32> -> vector<64x128xf32>
    %c0_14 = arith.constant 0 : index
    %c0_15 = arith.constant 0 : index
    %c0_16 = arith.constant 0 : index
    %25 = vector.load %arg4[%c0_14, %c0_15, %c0_16] : memref<1x3x128xf32, #tpu.memory_space<vmem>>, vector<1x1x128xf32>
    %26 = vector.shape_cast %25 : vector<1x1x128xf32> to vector<1x128xf32>
    %27 = vector.broadcast %26 : vector<1x128xf32> to vector<64x128xf32>
    %28 = arith.addf %24, %27 : vector<64x128xf32>
    %c5_i32 = arith.constant 5 : i32
    %29 = arith.cmpi ne, %arg0, %c5_i32 : i32
    %cst_17 = arith.constant 0.000000e+00 : f32
    %30 = vector.broadcast %cst_17 : f32 to vector<64x128xf32>
    %31 = arith.maximumf %28, %30 : vector<64x128xf32>
    %32 = arith.select %29, %31, %28 : vector<64x128xf32>
    %33 = tpu.iota {dimensions = array<i32: 0>} : vector<64x128xi32>
    %34 = vector.broadcast %4 : i32 to vector<64x128xi32>
    %35 = arith.addi %33, %34 : vector<64x128xi32>
    %c200_i32 = arith.constant 200 : i32
    %36 = vector.broadcast %c200_i32 : i32 to vector<64x128xi32>
    %37 = arith.cmpi slt, %35, %36 : vector<64x128xi32>
    %38 = arith.extui %37 : vector<64x128xi1> to vector<64x128xi32>
    %39 = arith.sitofp %38 : vector<64x128xi32> to vector<64x128xf32>
    %c64_i32_18 = arith.constant 64 : i32
    %40 = arith.muli %arg1, %c64_i32_18 : i32
    %41 = arith.sitofp %40 : i32 to f32
    %c64_i32_19 = arith.constant 64 : i32
    %42 = arith.muli %arg1, %c64_i32_19 : i32
    %c200_i32_20 = arith.constant 200 : i32
    %43 = arith.subi %c200_i32_20, %42 : i32
    %c64_i32_21 = arith.constant 64 : i32
    %44 = arith.minsi %43, %c64_i32_21 : i32
    %45 = arith.sitofp %44 : i32 to f32
    %46 = arith.mulf %32, %39 : vector<64x128xf32>
    %cst_22 = arith.constant dense<0.000000e+00> : vector<128xf32>
    %47 = vector.multi_reduction <add>, %46, %cst_22 [0] : vector<64x128xf32> to vector<128xf32>
    %48 = vector.shape_cast %47 : vector<128xf32> to vector<1x128xf32>
    %49 = vector.broadcast %45 : f32 to vector<1x128xf32>
    %50 = arith.divf %48, %49 : vector<1x128xf32>
    %51 = vector.broadcast %50 : vector<1x128xf32> to vector<64x128xf32>
    %52 = arith.subf %32, %51 : vector<64x128xf32>
    %53 = arith.mulf %52, %39 : vector<64x128xf32>
    %54 = arith.mulf %53, %53 : vector<64x128xf32>
    %cst_23 = arith.constant dense<0.000000e+00> : vector<128xf32>
    %55 = vector.multi_reduction <add>, %54, %cst_23 [0] : vector<64x128xf32> to vector<128xf32>
    %56 = vector.shape_cast %55 : vector<128xf32> to vector<1x128xf32>
    %57 = arith.addf %41, %45 : f32
    %c0_24 = arith.constant 0 : index
    %c0_25 = arith.constant 0 : index
    %58 = vector.load %arg9[%c0_24, %c0_25] : memref<1x128xf32, #tpu.memory_space<vmem>>, vector<1x128xf32>
    %59 = arith.subf %50, %58 : vector<1x128xf32>
    %c0_26 = arith.constant 0 : index
    %c0_27 = arith.constant 0 : index
    %60 = vector.load %arg9[%c0_26, %c0_27] : memref<1x128xf32, #tpu.memory_space<vmem>>, vector<1x128xf32>
    %61 = arith.divf %45, %57 : f32
    %62 = vector.broadcast %61 : f32 to vector<1x128xf32>
    %63 = arith.mulf %59, %62 : vector<1x128xf32>
    %64 = arith.addf %60, %63 : vector<1x128xf32>
    %c0_28 = arith.constant 0 : index
    %c0_29 = arith.constant 0 : index
    %65 = vector.load %arg9[%c0_28, %c0_29] : memref<1x128xf32, #tpu.memory_space<vmem>>, vector<1x128xf32>
    tpu.vector_store %arg9[%c0_28, %c0_29], %64 {strides = array<i32>} : memref<1x128xf32, #tpu.memory_space<vmem>>, vector<1x128xf32>,
    %c0_30 = arith.constant 0 : index
    %c0_31 = arith.constant 0 : index
    %66 = vector.load %arg10[%c0_30, %c0_31] : memref<1x128xf32, #tpu.memory_space<vmem>>, vector<1x128xf32>
    %67 = arith.addf %66, %56 : vector<1x128xf32>
    %68 = arith.mulf %59, %59 : vector<1x128xf32>
    %69 = arith.mulf %41, %45 : f32
    %70 = arith.divf %69, %57 : f32
    %71 = vector.broadcast %70 : f32 to vector<1x128xf32>
    %72 = arith.mulf %68, %71 : vector<1x128xf32>
    %73 = arith.addf %67, %72 : vector<1x128xf32>
    %c0_32 = arith.constant 0 : index
    %c0_33 = arith.constant 0 : index
    %74 = vector.load %arg10[%c0_32, %c0_33] : memref<1x128xf32, #tpu.memory_space<vmem>>, vector<1x128xf32>
    tpu.vector_store %arg10[%c0_32, %c0_33], %73 {strides = array<i32>} : memref<1x128xf32, #tpu.memory_space<vmem>>, vector<1x128xf32>,
    %c0_34 = arith.constant 0 : index
    %c0_35 = arith.constant 0 : index
    %75 = vector.load %arg8[%c0_34, %c0_35] : memref<64x128xf32, #tpu.memory_space<vmem>>, vector<64x128xf32>
    tpu.vector_store %arg8[%c0_34, %c0_35], %32 {strides = array<i32>} : memref<64x128xf32, #tpu.memory_space<vmem>>, vector<64x128xf32>,
    %c5_i32_36 = arith.constant 5 : i32
    %76 = arith.cmpi slt, %arg0, %c5_i32_36 : i32
    %77 = arith.extui %76 : i1 to i32
    %c0_i32_37 = arith.constant 0 : i32
    %78 = arith.cmpi ne, %77, %c0_i32_37 : i32
    scf.if %78 {
      %c2_i32 = arith.constant 2 : i32
      %c0_i32_40 = arith.constant 0 : i32
      %82 = arith.cmpi eq, %c2_i32, %c0_i32_40 : i32
      %c1_i32 = arith.constant 1 : i32
      %83 = arith.select %82, %c1_i32, %c2_i32 : i32
      %84 = arith.remsi %arg0, %83 : i32
      %c0_i32_41 = arith.constant 0 : i32
      %85 = arith.cmpi ne, %84, %c0_i32_41 : i32
      %c0_i32_42 = arith.constant 0 : i32
      %86 = arith.cmpi slt, %84, %c0_i32_42 : i32
      %c0_i32_43 = arith.constant 0 : i32
      %87 = arith.cmpi slt, %83, %c0_i32_43 : i32
      %88 = arith.xori %86, %87 : i1
      %89 = arith.andi %88, %85 : i1
      %90 = arith.addi %84, %83 : i32
      %91 = arith.select %89, %90, %84 : i32
      %c0_i32_44 = arith.constant 0 : i32
      %c0_i32_45 = arith.constant 0 : i32
      %92 = tpu.memref_slice %arg6[%91, %4, %c0_i32_45] : memref<2x256x128xf32, #tpu.memory_space<any>> -> memref<1x64x128xf32, #tpu.memory_space<any>>
      %93 = tpu.memref_squeeze %92 : memref<1x64x128xf32, #tpu.memory_space<any>> -> memref<64x128xf32, #tpu.memory_space<any>>
      %94 = tpu.memref_slice %arg13[%c0_i32_44] : memref<1x!tpu.dma_semaphore, #tpu.memory_space<semaphore_mem>> -> memref<1x!tpu.dma_semaphore, #tpu.memory_space<semaphore_mem>>
      %95 = tpu.memref_squeeze %94 : memref<1x!tpu.dma_semaphore, #tpu.memory_space<semaphore_mem>> -> memref<!tpu.dma_semaphore, #tpu.memory_space<semaphore_mem>>
      tpu.enqueue_dma source(%arg8 : memref<64x128xf32, #tpu.memory_space<vmem>>) target(%93 : memref<64x128xf32, #tpu.memory_space<any>>) target_semaphore(%95 : memref<!tpu.dma_semaphore, #tpu.memory_space<semaphore_mem>>)
      %c0_i32_46 = arith.constant 0 : i32
      %c0_i32_47 = arith.constant 0 : i32
      %96 = tpu.memref_slice %arg6[%91, %4, %c0_i32_47] : memref<2x256x128xf32, #tpu.memory_space<any>> -> memref<1x64x128xf32, #tpu.memory_space<any>>
      %97 = tpu.memref_squeeze %96 : memref<1x64x128xf32, #tpu.memory_space<any>> -> memref<64x128xf32, #tpu.memory_space<any>>
      %98 = tpu.memref_slice %arg13[%c0_i32_46] : memref<1x!tpu.dma_semaphore, #tpu.memory_space<semaphore_mem>> -> memref<1x!tpu.dma_semaphore, #tpu.memory_space<semaphore_mem>>
      %99 = tpu.memref_squeeze %98 : memref<1x!tpu.dma_semaphore, #tpu.memory_space<semaphore_mem>> -> memref<!tpu.dma_semaphore, #tpu.memory_space<semaphore_mem>>
      tpu.wait_dma2 semaphore(%99 : memref<!tpu.dma_semaphore, #tpu.memory_space<semaphore_mem>>) src(%arg8 : memref<64x128xf32, #tpu.memory_space<vmem>>) dst(%97 : memref<64x128xf32, #tpu.memory_space<any>>)
    } else {
    }
    %c5_i32_38 = arith.constant 5 : i32
    %79 = arith.cmpi eq, %arg0, %c5_i32_38 : i32
    %80 = arith.extui %79 : i1 to i32
    %c0_i32_39 = arith.constant 0 : i32
    %81 = arith.cmpi ne, %80, %c0_i32_39 : i32
    scf.if %81 {
      %c0_i32_40 = arith.constant 0 : i32
      %c0_i32_41 = arith.constant 0 : i32
      %82 = tpu.memref_slice %arg5[%4, %c0_i32_41] : memref<256x128xf32, #tpu.memory_space<any>> -> memref<64x128xf32, #tpu.memory_space<any>>
      %83 = tpu.memref_slice %arg13[%c0_i32_40] : memref<1x!tpu.dma_semaphore, #tpu.memory_space<semaphore_mem>> -> memref<1x!tpu.dma_semaphore, #tpu.memory_space<semaphore_mem>>
      %84 = tpu.memref_squeeze %83 : memref<1x!tpu.dma_semaphore, #tpu.memory_space<semaphore_mem>> -> memref<!tpu.dma_semaphore, #tpu.memory_space<semaphore_mem>>
      tpu.enqueue_dma source(%arg8 : memref<64x128xf32, #tpu.memory_space<vmem>>) target(%82 : memref<64x128xf32, #tpu.memory_space<any>>) target_semaphore(%84 : memref<!tpu.dma_semaphore, #tpu.memory_space<semaphore_mem>>)
      %c0_i32_42 = arith.constant 0 : i32
      %c0_i32_43 = arith.constant 0 : i32
      %85 = tpu.memref_slice %arg5[%4, %c0_i32_43] : memref<256x128xf32, #tpu.memory_space<any>> -> memref<64x128xf32, #tpu.memory_space<any>>
      %86 = tpu.memref_slice %arg13[%c0_i32_42] : memref<1x!tpu.dma_semaphore, #tpu.memory_space<semaphore_mem>> -> memref<1x!tpu.dma_semaphore, #tpu.memory_space<semaphore_mem>>
      %87 = tpu.memref_squeeze %86 : memref<1x!tpu.dma_semaphore, #tpu.memory_space<semaphore_mem>> -> memref<!tpu.dma_semaphore, #tpu.memory_space<semaphore_mem>>
      tpu.wait_dma2 semaphore(%87 : memref<!tpu.dma_semaphore, #tpu.memory_space<semaphore_mem>>) src(%arg8 : memref<64x128xf32, #tpu.memory_space<vmem>>) dst(%85 : memref<64x128xf32, #tpu.memory_space<any>>)
    } else {
    }
    return
  }
  func.func @transform_1(%arg0: i32, %arg1: i32) -> (i32, i32, i32) {
    %c0_i32 = arith.constant 0 : i32
    %c0_i32_0 = arith.constant 0 : i32
    %c0_i32_1 = arith.constant 0 : i32
    return %arg0, %c0_i32, %c0_i32_0 : i32, i32, i32
  }
  func.func @transform_2(%arg0: i32, %arg1: i32) -> (i32, i32, i32) {
    %c0_i32 = arith.constant 0 : i32
    %c0_i32_0 = arith.constant 0 : i32
    %c0_i32_1 = arith.constant 0 : i32
    return %arg0, %c0_i32, %c0_i32_0 : i32, i32, i32
  }
}

</mosaic_0001>

<bundles_post_ra>
// kernel: tpu_custom_call.1
= control target key start
LH: loop header
LB: loop body
LE: loop exit
PB: predicated region body
PF: predicated region fallthrough
CT: control target
= control target key end

     0   :  { %s1678_s0 = inlined_call_operand.hbm [shape: f32[256,128], index: 0, kind: input, shape index: {}]   ;;  %s1679_s1 = inlined_call_operand.hbm [shape: f32[6,128,128], index: 1, kind: input, shape index: {}]   ;;  %s1680_s2 = inlined_call_operand.hbm [shape: f32[6,3,128], index: 2, kind: input, shape index: {}]   ;;  %s1681_s3 = inlined_call_operand.hbm [shape: f32[256,128], index: 3, kind: output, shape index: {0}]   ;;  %s1682_s4 = inlined_call_operand.hbm [shape: f32[2,256,128], index: 4, kind: output, shape index: {1}]  }
   0x1   :  { %1684 = sst [smem:[#allocation30_spill]] %s1679_s1 }
   0x2   :  { %10 = vsyncpa [#allocation10], 0 }
   0x3   :  { %12 = vsyncpa [#allocation10 + $0x1], 0 }
   0x4   :  { %13 = vsyncpa [#allocation12], 0 }
   0x5   :  { %15 = vsyncpa [#allocation12 + $0x1], 0  ;;  %s1186_s15 = smov 0   ;;  %s1188_s16 = smov 0  }
   0x6   :  { %s1190_s17 = smov 0   ;;  %s1192_s18 = smov 0  }
   0x7   :  { %s1194_s19 = smov 0   ;;  %s1196_s20 = smov 0  }
   0x8   :  { %s1198_s21 = smov 0   ;;  %s1200_s22 = smov 0  }
   0x9 LB: > { %s695_s23 = sadd.s32 4294967295, %s1152_s22   ;;  %s27_s24 = sadd.s32 1, %s1144_s20  ;;  %s1152_s22 = sphi %s1200_s22, %s21_s22   ;;  %s1148_s21 = sphi %s1198_s21, %s1704_s21   ;;  %s1144_s20 = sphi %s1196_s20, %s1703_s20   ;;  %s1140_s19 = sphi %s1194_s19, %s1702_s19   ;;  %s1136_s18 = sphi %s1192_s18, %s1701_s18   ;;  %s1132_s17 = sphi %s1190_s17, %s1700_s17   ;;  %s1128_s16 = sphi %s1188_s16, %s1699_s16   ;;  %s1124_s15 = sphi %s1186_s15, %s1698_s15  }
   0xa   : > { %p28_p0 = scmp.ge.s32.totalorder %s27_s24, 4  ;;  %s30_s25 = sadd.s32 1, %s1148_s21 }
   0xb   : > { %s37_s26 = sadd.s32 1, %s1132_s17  ;;  %p43_p1 = scmp.ne.s32.totalorder %s1132_s17, %s1128_s16 }
   0xc   : > { %s1706_s24 = smov (%p28_p0, %s27_s24), 0  ;;  %s1708_s25 = smov (!%p28_p0, %s30_s25), %s1148_s21 }
   0xd   : > { %p44_p2 = scmp.eq.s32.totalorder %s1152_s22, 0  ;;  %p50_p3 = scmp.ne.s32.totalorder %s1128_s16, %s1124_s15 }
   0xe   : > { %p32_p4 = scmp.ge.s32.totalorder %s1708_s25, 6  ;;  %p51_p5 = scmp.eq.s32.totalorder %s695_s23, 0 }
   0xf   : > { %p1235_p6 = por %p44_p2, %p43_p1  ;;  %p807_p8 = scmp.lt.s32.totalorder %s1152_s22, 24 }
  0x10   : > { %s1710_s25 = smov (%p32_p4, %s1708_s25), 0  ;;  %p1241_p7 = por %p51_p5, %p50_p3 }
  0x11   : > { %1686 = sst [smem:[#allocation29_spill]] %s1710_s25  ;;  %s34_s29 = ssub.s32 %s1148_s21, %s1710_s25 }
  0x12   : > { %s84_s30 = sand.u32 1, %s1132_s17   ;;  %p35_p9 = scmp.eq.s32.totalorder %s34_s29, 0 }
  0x13   : > { %s699_s5 = sshll.u32 %s84_s30, 7  ;;  %s733_s6 = sshll.u32 %s1148_s21, 7 }
  0x14   : > { %s1251_s7 = scalar_select %p35_p9, %s1132_s17, %s37_s26  }
  0x15   : > { %s1688_s1 = sld [smem:[#allocation30_spill]]  ;;  %s88_s12 = scalar_lea.vmem [#allocation9], %s699_s5 }
  0x16   : > { %s96_s13 = sshll.u32 %s88_s12, 4  ;;  %p1260_p10 = pnand %p807_p8, %p1235_p6  ;;  %s97_s13 = int_to_ptr.vmem [resolvable:$true] %s96_s13 }
  0x17   : > { %s702_s15 = sshll.u32 %s84_s30, 2  ;;  %s85_s23 = scalar_lea.sflag [#allocation10], %s84_s30 }
  0x18   : > { %s1154_s26 = smov 128   ;;  %s1155_s29 = smov 8  }
  0x19   : > { %p705_p11 = scmp.lt.s32.totalorder %s1152_s22, 1 }
  0x1a   : > { %s127_s25 = sand.u32 (!%p705_p11), 1, %s1128_s16  }
  0x1b   : > { %s93_s10 = scalar_lea.hbm %s1688_s1, %s733_s6  ;;  %s703_s6 = sshll.u32 %s1148_s21, 2 }
  0x1c   : > { %s94_s11 = sshll.u32 %s93_s10, 4  ;;  %s114_s9 = scalar_lea.hbm %s1680_s2, %s703_s6  ;;  %s95_s11 = int_to_ptr.hbm [resolvable:$true] %s94_s11 }
  0x1d   : > { %803 = dma.hbm_to_vmem [thread:$0]  (!%p1260_p10), %s95_s11, 2048, %s97_s13, %s85_s23, %s1154_s26, %s1154_s26, %s1155_s29  }
  0x1e   : > { %s110_s10 = scalar_lea.vmem [#allocation11], %s702_s15  ;;  %s116_s12 = sshll.u32 %s114_s9, 4  ;;  %s117_s12 = int_to_ptr.hbm [resolvable:$true] %s116_s12 }
  0x1f   : > { %s118_s27 = sshll.u32 %s110_s10, 4  ;;  %s107_s1 = scalar_lea.sflag [#allocation12], %s84_s30  ;;  %s119_s27 = int_to_ptr.vmem [resolvable:$true] %s118_s27 }
  0x20   : > { %806 = dma.hbm_to_vmem [thread:$0]  (!%p1260_p10), %s117_s12, 64, %s119_s27, %s107_s1  }
  0x21   : > { %125 = sbr.rel (%p705_p11) target bundleno = 394 (0x18a), region = 28  ;;  %s706_s11 = sshll.u32 (!%p705_p11), %s127_s25, 7 }
  0x22   : > { %s128_s13 = scalar_lea.sflag (!%p705_p11), [#allocation10], %s127_s25  ;;  %s1274_s23 = scalar_lea.vmem (!%p705_p11), [#allocation9], %s706_s11 }
  0x26   : > { %1099 = dma.done.wait (%p1241_p7), %s128_s13, 2048  }
  0x27   : > { %1101 = vsyncadd (%p1241_p7), %s128_s13, 4294965248  ;;  %s707_s15 = sshll.u32 %s127_s25, 2  ;;  %s138_s30 = scalar_lea.sflag [#allocation12], %s127_s25 }
  0x28   : > { %s1280_s14 = scalar_lea.vmem [#allocation11], %s707_s15 }
  0x29   : > { %1103 = dma.done.wait (%p1241_p7), %s138_s30, 64  }
  0x2a   : > { %1105 = vsyncadd (%p1241_p7), %s138_s30, 4294967232  ;;  %p708_p12 = scmp.ne.s32.totalorder %s1136_s18, 0 }
  0x2c   : > { %164 = sbr.rel (%p708_p12) target bundleno = 97 (0x61), region = 40 }
  0x31   : > { %v1156_v0 = vmov 200.0   ;;  %v165_v5 = vld [vmem:[#allocation5] sm:$0x1]  ;;  %v190_v7 = vld [vmem:[#allocation4] sm:$0x1]  ;;  %v1157_v8 = vmov 0.0  }
  0x32   : > { %883 = vrcp.f32 %v1156_v0  ;;  %194 = vst [vmem:[#allocation4] sm:$0x1] %v1157_v8  ;;  %v186_v19 = vld [vmem:[%s1280_s14 + $0x1] sm:$0x1]  ;;  %v189_v22 = vld [vmem:[%s1280_s14 + $0x2] sm:$0x1] }
  0x33   : > { %195 = vst [vmem:[#allocation5] sm:$0x1] %v1157_v8 }
  0x38   : > { %v884_v1 = vpop.eup %883 }
  0x39   : > { %v167_v2 = vmul.f32 200.0, %v884_v1  ;;  %vm171_vm0 = vweird.f32 %v884_v1 }
  0x3b   : > { %v168_v3 = vsub.f32 1.0, %v167_v2 }
  0x3d   : > { %v169_v4 = vmul.f32 %v884_v1, %v168_v3 }
  0x3f   : > { %v170_v6 = vadd.f32 %v884_v1, %v169_v4 }
  0x41   : > { %v172_v9 = vsel %vm171_vm0, %v884_v1, %v170_v6 }
  0x42   : > { %v173_v10 = vmul.f32 %v172_v9, %v165_v5 }
  0x44   : > { %v174_v11 = vmax.f32 %v173_v10, 0.0 }
  0x46   : > { %v175_v12 = vadd.f32 1e-05, %v174_v11 }
  0x48   : > { %885 = vrsqrt.f32 %v175_v12  ;;  %vm182_vm1 = vweird.f32 %v175_v12 }
  0x4e   : > { %v886_v13 = vpop.eup %885 }
  0x4f   : > { %v177_v14 = vmul.f32 %v886_v13, %v175_v12  ;;  %vm183_vm2 = vweird.f32 %v886_v13 }
  0x50   : > { %vm184_vm3 = vmor %vm182_vm1, %vm183_vm2 }
  0x51   : > { %v178_v15 = vmul.f32 %v886_v13, %v177_v14 }
  0x53   : > { %v179_v16 = vmul.f32 0.5, %v178_v15 }
  0x55   : > { %v180_v17 = vsub.f32 1.5, %v179_v16 }
  0x57   : > { %v181_v18 = vmul.f32 %v886_v13, %v180_v17 }
  0x59   : > { %v185_v20 = vsel %vm184_vm3, %v886_v13, %v181_v18 }
  0x5a   : > { %v187_v21 = vmul.f32 %v186_v19, %v185_v20 }
  0x5c   : > { %188 = vst [vmem:[#allocation6] sm:$0x1] %v187_v21  ;;  %v191_v23 = vmul.f32 %v190_v7, %v187_v21 }
  0x5e   : > { %v192_v24 = vsub.f32 %v189_v22, %v191_v23 }
  0x60   : > { %193 = vst [vmem:[#allocation7] sm:$0x1] %v192_v24 }
  0x61 PF: > { %s1290_s1 = sshll.u32 %s1136_s18, 6  ;;  %p710_p13 = scmp.ne.s32.totalorder %s1140_s19, 0 }
  0x62   : > { %p808_p0 = scmp.eq.s32.totalorder %s1140_s19, 0  ;;  %s201_s26 = scalar_lea.hbm %s1678_s0, %s1290_s1 }
  0x63   : > { %s209_s29 = sshll.u32 %s201_s26, 4  ;;  %s1158_s6 = smov [#allocation2]   ;;  %s210_s29 = int_to_ptr.hbm [resolvable:$true] %s209_s29 }
  0x64   : > { %s1298_s8 = sshll.u32 %s1158_s6, 4  ;;  %s954_s5 = sshra.s32 %s210_s29, 4  ;;  %s212_s8 = int_to_ptr.vmem [resolvable:$true] %s1298_s8  ;;  %s955_s5 = int_to_ptr.hbm [resolvable:$true] %s954_s5 }
  0x65   : > { %s956_s9 = scalar_lea.hbm %s955_s5, 64  ;;  %s960_s27 = scalar_lea.hbm %s1678_s0, 256 }
  0x66   : > { %p957_p1 = scmp.ne.s32.totalorder %s955_s5, %s956_s9  ;;  %p961_p4 = scmp.lt.s32.totalorder %s955_s5, %s1678_s0 }
  0x67   : > { %p962_p5 = scmp.lt.s32.totalorder %s960_s27, %s956_s9 }
  0x68   : > { %p958_p2 = pnand %p957_p1, %p808_p0 }
  0x69   : > { %p963_p6 = por %p962_p5, %p961_p4 }
  0x6a   : > { %p959_p3 = pneg %p958_p2 }
  0x6c   : > { %p964_p7 = pnand %p963_p6, %p959_p3 }
  0x6e   : > { %967 = shalt.err (!%p964_p7)  }
  0x6f   : > { %789 = dma.hbm_to_vmem [thread:$0]  (%p808_p0), %s210_s29, 1024, %s212_s8, [#allocation8] }
  0x70   : > { %1107 = dma.done.wait (%p808_p0), [#allocation8], 1024 }
  0x71   : > { %1109 = vsyncadd (%p808_p0), [#allocation8], 4294966272  ;;  %s712_s13 = sadd.s32 4294967295, %s1140_s19  ;;  %p809_p10 = scmp.gt.s32.totalorder %s1140_s19, 0 }
  0x72   : > { %p223_p8 = scmp.lt.s32.totalorder %s712_s13, 0  ;;  %s224_s15 = ssub.s32 0, %s712_s13 }
  0x73   : > { %s713_s30 = smin.u32 %s712_s13, %s224_s15  ;;  %s988_s15 = scalar_lea.hbm %s1682_s4, 512 }
  0x74   : > { %s226_s25 = sand.u32 1, %s713_s30  }
  0x75   : > { %s227_s28 = ssub.s32 0, %s226_s25 }
  0x76   : > { %s1712_s28 = smov (!%p223_p8, %s227_s28), %s226_s25 }
  0x77   : > { %p715_p9 = scmp.lt.s32.totalorder %s1712_s28, 0  ;;  %s233_s26 = sadd.s32 2, %s1712_s28 }
  0x79   : > { %s1714_s26 = smov (!%p715_p9, %s233_s26), %s1712_s28 }
  0x7a   : > { %s716_s29 = sshll.u32 %s1714_s26, 8 }
  0x7b   : > { %s236_s6 = sadd.s32 %s716_s29, %s1290_s1 }
  0x7c   : > { %s237_s18 = scalar_lea.hbm %s1682_s4, %s236_s6 }
  0x7d   : > { %s245_s10 = sshll.u32 %s237_s18, 4  ;;  %s246_s10 = int_to_ptr.hbm [resolvable:$true] %s245_s10 }
  0x7e   : > { %s982_s27 = sshra.s32 %s246_s10, 4  ;;  %s983_s27 = int_to_ptr.hbm [resolvable:$true] %s982_s27 }
  0x7f   : > { %s984_s12 = scalar_lea.hbm %s983_s27, 64  ;;  %p989_p1 = scmp.lt.s32.totalorder %s983_s27, %s1682_s4 }
  0x80   : > { %p985_p11 = scmp.ne.s32.totalorder %s983_s27, %s984_s12  ;;  %p990_p2 = scmp.lt.s32.totalorder %s988_s15, %s984_s12 }
  0x82   : > { %p986_p12 = pnand %p985_p11, %p809_p10  ;;  %p991_p3 = por %p990_p2, %p989_p1 }
  0x84   : > { %p987_p0 = pneg %p986_p12 }
  0x86   : > { %p992_p4 = pnand %p991_p3, %p987_p0 }
  0x88   : > { %995 = shalt.err (!%p992_p4)  }
  0x89   : > { %792 = dma.hbm_to_vmem [thread:$0]  (%p809_p10), %s246_s10, 1024, %s212_s8, [#allocation8] }
  0x8a   : > { %1111 = dma.done.wait (%p809_p10), [#allocation8], 1024 }
  0x8b   : > { %1113 = vsyncadd (%p809_p10), [#allocation8], 4294966272  ;;  %s423_s29 = ssub.s32 200, %s1290_s1  ;;  %v316_v25 = vld [vmem:[%s1274_s23 + $0x78] sm:$0xff]  ;;  %v315_v26 = vld [vmem:[%s1274_s23 + $0x70] sm:$0xff]  ;;  %s422_s8 = scvt.s32.f32 %s1290_s1 }
  0x8c   : > { %p424_p5 = scmp.lt.s32.totalorder %s423_s29, 64  ;;  %319 = vmatpush.msra.mxu0 %v316_v25  ;;  %735 = vmatpush.msra.mxu2 %v316_v25  ;;  %v314_v27 = vld [vmem:[%s1274_s23 + $0x68] sm:$0xff]  ;;  %v313_v28 = vld [vmem:[%s1274_s23 + $0x60] sm:$0xff]  ;;  %v312_v29 = vld [vmem:[%s1274_s23 + $0x58] sm:$0xff]  ;;  %p287_p6 = scmp.ne.s32.totalorder %s1140_s19, 3 }
  0x8d   : > { %734 = vmatpush.msra.mxu1 %v316_v25  ;;  %736 = vmatpush.msra.mxu3 %v316_v25  ;;  %v311_v30 = vld [vmem:[%s1274_s23 + $0x50] sm:$0xff]  ;;  %v310_v31 = vld [vmem:[%s1274_s23 + $0x48] sm:$0xff]  ;;  %v309_v32 = vld [vmem:[%s1274_s23 + $0x40] sm:$0xff]  ;;  %p562_p8 = scmp.lt.s32.totalorder %s1140_s19, 0  ;;  %v380_v25 = vlaneseq  ;;  %p810_p10 = scmp.lt.s32.totalorder %s1140_s19, 5 }
  0x8e   : > { %s1716_s29 = smov (!%p424_p5, %s423_s29), 64  ;;  %320 = vmatpush.msra.mxu0 %v315_v26  ;;  %738 = vmatpush.msra.mxu2 %v315_v26  ;;  %v308_v34 = vld [vmem:[%s1274_s23 + $0x38] sm:$0xff]  ;;  %p1367_p7 = pnand %p710_p13, %p287_p6  ;;  %v307_v35 = vld [vmem:[%s1274_s23 + $0x30] sm:$0xff]  ;;  %v306_v36 = vld [vmem:[%s1274_s23 + $0x28] sm:$0xff] }
  0x8f   : > { %737 = vmatpush.msra.mxu1 %v315_v26  ;;  %739 = vmatpush.msra.mxu3 %v315_v26  ;;  %s1349_s6 = scvt.s32.f32 %s1716_s29  ;;  %v1373_v37 = vld [vmem:[#allocation6] ss:$0 sm:$0xff]  ;;  %v1379_v40 = vld [vmem:[#allocation2 + $0x10] sm:$0xff]  ;;  %v305_v42 = vld [vmem:[%s1274_s23 + $0x20] sm:$0xff]  ;;  %p360_p13 = scmp.ne.s32.totalorder %s1140_s19, 5 }
  0x90   : > { %321 = vmatpush.msra.mxu0 %v314_v27  ;;  %741 = vmatpush.msra.mxu2 %v314_v27  ;;  %v1375_v38 = vld [vmem:[#allocation2] sm:$0xff]  ;;  %s717_s18 = scalar_select %p1367_p7, 0, 1  ;;  %v260_v43 = vld [vmem:[#allocation2 + $0x30] sm:$0xff]  ;;  %v268_v48 = vmul.f32 %v1373_v37, %v1379_v40  ;;  %v255_v59 = vld [vmem:[#allocation2 + $0x8] sm:$0xff] }
  0x91   : > { %740 = vmatpush.msra.mxu1 %v314_v27  ;;  %742 = vmatpush.msra.mxu3 %v314_v27  ;;  %s501_s5 = sadd.f32 %s1349_s6, %s422_s8  ;;  %v1377_v39 = vld [vmem:[#allocation2 + $0x20] sm:$0xff]  ;;  %v266_v45 = vmul.f32 %v1373_v37, %v1375_v38  ;;  %v272_v54 = vmul.f32 %v1373_v37, %v260_v43  ;;  %v303_v55 = vld [vmem:[%s1274_s23 + $0x10] sm:$0xff]  ;;  %v259_v60 = vld [vmem:[#allocation2 + $0x28] sm:$0xff]  ;;  %v267_v5 = vmul.f32 %v1373_v37, %v255_v59  ;;  %v381_v27 = vshrl.u32 %v380_v25, 7  ;;  %s1160_s29 = smov [#allocation3]  }
  0x92   : > { %322 = vmatpush.msra.mxu0 %v313_v28  ;;  %744 = vmatpush.msra.mxu2 %v313_v28  ;;  %v1390_v46 = vld [vmem:[#allocation7] ss:$0 sm:$0xff]  ;;  %v270_v47 = vmul.f32 %v1373_v37, %v1377_v39  ;;  %v291_v53 = vstv %s717_s18  ;;  %v302_v63 = vld [vmem:[%s1274_s23 + $0x8] sm:$0xff]  ;;  %v301_v4 = vld [vmem:[%s1274_s23] sm:$0xff]  ;;  %v271_v6 = vmul.f32 %v1373_v37, %v259_v60  ;;  %s369_s11 = scalar_select %p360_p13, 1, 0 }
  0x93   : > { %743 = vmatpush.msra.mxu1 %v313_v28  ;;  %745 = vmatpush.msra.mxu3 %v313_v28  ;;  %v1359_v33 = vstv %s501_s5  ;;  %v304_v50 = vld [vmem:[%s1274_s23 + $0x18] sm:$0xff]  ;;  %v278_v57 = vadd.f32 %v1390_v46, %v266_v45  ;;  %vm292_vm7 = vcmp.eq.s32.totalorder %v291_v53, 1  ;;  %v280_v0 = vadd.f32 %v1390_v46, %v268_v48  ;;  %s563_s23 = ssub.s32 0, %s1140_s19  ;;  %v1452_v26 = vld [vmem:[%s1280_s14] ss:$0 sm:$0xff]  ;;  %s1547_s5 = sshll.u32 %s1160_s29, 4  ;;  %s585_s5 = int_to_ptr.vmem [resolvable:$true] %s1547_s5 }
  0x94   : > { %323 = vmatpush.msra.mxu0 %v312_v29  ;;  %747 = vmatpush.msra.mxu2 %v312_v29  ;;  %890 = vrcp.f32 %v1359_v33  ;;  %v516_v49 = vand.u32 2147483648, %v1359_v33  ;;  %vm510_vm4 = vweird.f32 %v1359_v33  ;;  %v514_v52 = vand.u32 2147483647, %v1359_v33  ;;  %v257_v7 = vld [vmem:[#allocation2 + $0x18] sm:$0xff]  ;;  %s727_s10 = smin.u32 %s1140_s19, %s563_s23 }
  0x95   : > { %746 = vmatpush.msra.mxu1 %v312_v29  ;;  %748 = vmatpush.msra.mxu3 %v312_v29  ;;  %v282_v58 = vadd.f32 %v1390_v46, %v270_v47  ;;  %v284_v3 = vadd.f32 %v1390_v46, %v272_v54  ;;  %v261_v8 = vld [vmem:[#allocation2 + $0x38] sm:$0xff]  ;;  %v293_v10 = vsel %vm292_vm7, %v278_v57, %v1375_v38  ;;  %s565_s27 = sand.u32 1, %s727_s10   ;;  %v370_v28 = vstv %s369_s11 }
  0x96   : > { %324 = vmatpush.msra.mxu0 %v311_v30  ;;  %750 = vmatpush.msra.mxu2 %v311_v30  ;;  %v517_v62 = vor.u32 1.1754944e-38, %v516_v49  ;;  %vm1417_vm8 = vcmp.eq.f32.partialorder %v514_v52, 8.507059e+37  ;;  %v295_v13 = vsel %vm292_vm7, %v280_v0, %v1379_v40  ;;  %v269_v15 = vmul.f32 %v1373_v37, %v257_v7  ;;  %s566_s12 = ssub.s32 0, %s565_s27 }
  0x97   : > { %749 = vmatpush.msra.mxu1 %v311_v30  ;;  %751 = vmatpush.msra.mxu3 %v311_v30  ;;  %v297_v11 = vsel %vm292_vm7, %v282_v58, %v1377_v39  ;;  %v299_v14 = vsel %vm292_vm7, %v284_v3, %v260_v43  ;;  %v273_v16 = vmul.f32 %v1373_v37, %v261_v8  ;;  %s1718_s12 = smov (!%p562_p8, %s566_s12), %s565_s27  ;;  %v1455_v29 = vstv %s1290_s1 }
  0x98   : > { %325 = vmatpush.msra.mxu0 %v310_v31  ;;  %753 = vmatpush.msra.mxu2 %v310_v31  ;;  %v279_v17 = vadd.f32 %v1390_v46, %v267_v5  ;;  %v283_v18 = vadd.f32 %v1390_v46, %v271_v6  ;;  %v281_v19 = vadd.f32 %v1390_v46, %v269_v15  ;;  %v382_v30 = vadd.s32 8, %v381_v27  ;;  %p729_p9 = scmp.lt.s32.totalorder %s1718_s12, 0  ;;  %s572_s13 = sadd.s32 2, %s1718_s12 }
  0x99   : > { %752 = vmatpush.msra.mxu1 %v310_v31  ;;  %754 = vmatpush.msra.mxu3 %v310_v31  ;;  %v285_v20 = vadd.f32 %v1390_v46, %v273_v16  ;;  %vm1458_vm9 = vcmp.eq.s32.totalorder %v370_v28, 1  ;;  %v384_v40 = vadd.s32 24, %v381_v27  ;;  %v385_v46 = vadd.s32 32, %v381_v27 }
  0x9a   : > { %326 = vmatpush.msra.mxu0 %v309_v32  ;;  %756 = vmatpush.msra.mxu2 %v309_v32  ;;  %v1381_v41 = vpop.eup %890  ;;  %v294_v21 = vsel %vm292_vm7, %v279_v17, %v255_v59  ;;  %v298_v22 = vsel %vm292_vm7, %v283_v18, %v259_v60  ;;  %v296_v23 = vsel %vm292_vm7, %v281_v19, %v257_v7  ;;  %s1720_s13 = smov (!%p729_p9, %s572_s13), %s1718_s12  ;;  %v386_v52 = vadd.s32 40, %v381_v27 }
  0x9b   : > { %755 = vmatpush.msra.mxu1 %v309_v32  ;;  %757 = vmatpush.msra.mxu3 %v309_v32  ;;  %v506_v44 = vmul.f32 %v1381_v41, %v1359_v33  ;;  %vm511_vm5 = vweird.f32 %v1381_v41  ;;  %v300_v24 = vsel %vm292_vm7, %v285_v20, %v261_v8  ;;  %v391_v39 = vadd.s32 %v1455_v29, %v382_v30  ;;  %s730_s14 = sshll.u32 %s1720_s13, 8 }
  0x9c   : > { %327 = vmatpush.msra.mxu0 %v308_v34  ;;  %759 = vmatpush.msra.mxu2 %v308_v34  ;;  %vm1410_vm6 = vmor %vm510_vm4, %vm511_vm5  ;;  %v1159_v53 = vmov 0.0   ;;  %v394_v58 = vadd.s32 %v1455_v29, %v385_v46  ;;  %v387_v61 = vadd.s32 48, %v381_v27  ;;  %s1501_s30 = sadd.s32 %s730_s14, %s1290_s1  ;;  %v395_v2 = vadd.s32 %v1455_v29, %v386_v52 }
  0x9d   : > { %758 = vmatpush.msra.mxu1 %v308_v34  ;;  %760 = vmatpush.msra.mxu3 %v308_v34  ;;  %v507_v51 = vsub.f32 1.0, %v506_v44  ;;  %v390_v34 = vadd.s32 %v1455_v29, %v381_v27  ;;  %vm399_vm11 = vcmp.lt.s32.totalorder %v391_v39, 200  ;;  %v388_v3 = vadd.s32 56, %v381_v27  ;;  %s576_s26 = scalar_lea.hbm %s1682_s4, %s1501_s30 }
  0x9e   : > { %328 = vmatpush.msra.mxu0 %v307_v35  ;;  %762 = vmatpush.msra.mxu2 %v307_v35  ;;  %v1493_v59 = vsel %vm399_vm11, 1.0, %v1159_v53  ;;  %vm402_vm14 = vcmp.lt.s32.totalorder %v394_v58, 200  ;;  %vm403_vm15 = vcmp.lt.s32.totalorder %v395_v2, 200  ;;  %s1549_s9 = sshll.u32 %s576_s26, 4  ;;  %s587_s9 = int_to_ptr.hbm [resolvable:$true] %s1549_s9 }
  0x9f   : > { %761 = vmatpush.msra.mxu1 %v307_v35  ;;  %763 = vmatpush.msra.mxu3 %v307_v35  ;;  %v508_v56 = vmul.f32 %v1381_v41, %v507_v51  ;;  %vm398_vm10 = vcmp.lt.s32.totalorder %v390_v34, 200  ;;  %v397_v19 = vadd.s32 %v1455_v29, %v388_v3  ;;  %v1544_v20 = vsel %vm402_vm14, 1.0, %v1159_v53  ;;  %s1024_s18 = sshra.s32 %s587_s9, 4  ;;  %s1025_s18 = int_to_ptr.hbm [resolvable:$true] %s1024_s18 }
  0xa0   : > { %329 = vmatpush.msra.mxu0 %v306_v36  ;;  %765 = vmatpush.msra.mxu2 %v306_v36  ;;  %v1487_v54 = vsel %vm398_vm10, 1.0, %v1159_v53  ;;  %s1026_s23 = scalar_lea.hbm %s1025_s18, 64  ;;  %p1031_p1 = scmp.lt.s32.totalorder %s1025_s18, %s1682_s4 }
  0xa1   : > { %764 = vmatpush.msra.mxu1 %v306_v36  ;;  %766 = vmatpush.msra.mxu3 %v306_v36  ;;  %v509_v1 = vadd.f32 %v1381_v41, %v508_v56  ;;  %v383_v36 = vadd.s32 16, %v381_v27  ;;  %v1558_v27 = vsel %vm403_vm15, 1.0, %v1159_v53  ;;  %vm405_vm1 = vcmp.lt.s32.totalorder %v397_v19, 200  ;;  %p1027_p11 = scmp.ne.s32.totalorder %s1025_s18, %s1026_s23  ;;  %p1032_p2 = scmp.lt.s32.totalorder %s988_s15, %s1026_s23 }
  0xa2   : > { %330 = vmatpush.msra.mxu0 %v305_v42  ;;  %768 = vmatpush.msra.mxu2 %v305_v42 }
  0xa3   : > { %767 = vmatpush.msra.mxu1 %v305_v42  ;;  %769 = vmatpush.msra.mxu3 %v305_v42  ;;  %v513_v9 = vsel %vm1410_vm6, %v1381_v41, %v509_v1  ;;  %v1468_v41 = vstv %s1349_s6  ;;  %v392_v44 = vadd.s32 %v1455_v29, %v383_v36  ;;  %v1579_v36 = vsel %vm405_vm1, 1.0, %v1159_v53  ;;  %p1028_p12 = pnand %p1027_p11, %p810_p10  ;;  %p1033_p3 = por %p1032_p2, %p1031_p1 }
  0xa4   : > { %331 = vmatpush.msra.mxu0 %v304_v50  ;;  %771 = vmatpush.msra.mxu2 %v304_v50  ;;  %v518_v12 = vsel %vm1417_vm8, %v517_v62, %v513_v9  ;;  %892 = vrcp.f32 %v1468_v41 }
  0xa5   : > { %770 = vmatpush.msra.mxu1 %v304_v50  ;;  %772 = vmatpush.msra.mxu3 %v304_v50  ;;  %782 = vpush %v518_v12  ;;  %v393_v50 = vadd.s32 %v1455_v29, %v384_v40  ;;  %vm400_vm12 = vcmp.lt.s32.totalorder %v392_v44, 200  ;;  %p1029_p0 = pneg %p1028_p12 }
  0xa6   : > { %332 = vmatpush.msra.mxu0 %v303_v55  ;;  %774 = vmatpush.msra.mxu2 %v303_v55 }
  0xa7   : > { %773 = vmatpush.msra.mxu1 %v303_v55  ;;  %775 = vmatpush.msra.mxu3 %v303_v55  ;;  %vm401_vm13 = vcmp.lt.s32.totalorder %v393_v50, 200  ;;  %p1034_p4 = pnand %p1033_p3, %p1029_p0 }
  0xa8   : > { %333 = vmatpush.msra.mxu0 %v302_v63  ;;  %777 = vmatpush.msra.mxu2 %v302_v63 }
  0xa9   : > { %776 = vmatpush.msra.mxu1 %v302_v63  ;;  %778 = vmatpush.msra.mxu3 %v302_v63 }
  0xaa   : > { %334 = vmatpush.msra.mxu0 %v301_v4  ;;  %780 = vmatpush.msra.mxu2 %v301_v4  ;;  %v1516_v8 = vpop.eup %892 }
  0xab   : > { %335 = vmatmul.f32.vlgmr.msra.gmra.mxu0 %v293_v10  ;;  %347 = vmatmul.f32.vlgmr.msra.gmra.mxu2 %v297_v11  ;;  %v396_v11 = vadd.s32 %v1455_v29, %v387_v61  ;;  %v450_v30 = vmul.f32 %v1516_v8, %v1468_v41 }
  0xac   : > { %779 = vmatpush.msra.mxu1 %v301_v4  ;;  %781 = vmatpush.msra.mxu3 %v301_v4  ;;  %v1506_v4 = vsel %vm400_vm12, 1.0, %v1159_v53 }
  0xad   : > { %341 = vmatmul.f32.vlgmr.msra.gmra.mxu1 %v295_v13  ;;  %353 = vmatmul.f32.vlgmr.msra.gmra.mxu3 %v299_v14  ;;  %v1534_v14 = vsel %vm401_vm13, 1.0, %v1159_v53  ;;  %vm404_vm0 = vcmp.lt.s32.totalorder %v396_v11, 200 }
  0xb3   : > { %338 = vmatmul.f32.gmra.mxu0 %v294_v21  ;;  %350 = vmatmul.f32.gmra.mxu2 %v298_v22 }
  0xb5   : > { %344 = vmatmul.f32.gmra.mxu1 %v296_v23  ;;  %356 = vmatmul.f32.gmra.mxu3 %v300_v24 }
 0x128   : > { %v336_v31 = vpop.f32.mrf.mxu0 }
 0x129   : > { %v337_v32 = vadd.f32 %v1452_v26, %v336_v31  ;;  %v1569_v31 = vsel %vm404_vm0, 1.0, %v1159_v53 }
 0x12a   : > { %v342_v35 = vpop.f32.mrf.mxu1 }
 0x12b   : > { %v361_v37 = vmax.f32 %v337_v32, 0.0  ;;  %v343_v38 = vadd.f32 %v1452_v26, %v342_v35 }
 0x12d   : > { %v1472_v42 = vsel %vm1458_vm9, %v361_v37, %v337_v32  ;;  %v363_v43 = vmax.f32 %v343_v38, 0.0 }
 0x12e   : > { %550 = vst [vmem:[#allocation3] sm:$0xff] %v1472_v42  ;;  %v348_v45 = vpop.f32.mrf.mxu2  ;;  %v427_v9 = vmul.f32 %v1487_v54, %v1472_v42 }
 0x12f   : > { %v1478_v47 = vsel %vm1458_vm9, %v363_v43, %v343_v38  ;;  %v349_v48 = vadd.f32 %v1452_v26, %v348_v45 }
 0x130   : > { %552 = vst [vmem:[#allocation3 + $0x10] sm:$0xff] %v1478_v47  ;;  %v339_v49 = vpop.f32.mrf.mxu0  ;;  %v354_v51 = vpop.f32.mrf.mxu3  ;;  %v429_v16 = vmul.f32 %v1506_v4, %v1478_v47 }
 0x131   : > { %v365_v55 = vmax.f32 %v349_v48, 0.0  ;;  %v340_v56 = vadd.f32 %v1452_v26, %v339_v49  ;;  %v355_v57 = vadd.f32 %v1452_v26, %v354_v51 }
 0x132   : > { %v345_v60 = vpop.f32.mrf.mxu1 }
 0x133   : > { %v1497_v62 = vsel %vm1458_vm9, %v365_v55, %v349_v48  ;;  %v362_v63 = vmax.f32 %v340_v56, 0.0  ;;  %v346_v0 = vadd.f32 %v1452_v26, %v345_v60  ;;  %v367_v1 = vmax.f32 %v355_v57, 0.0 }
 0x134   : > { %554 = vst [vmem:[#allocation3 + $0x20] sm:$0xff] %v1497_v62  ;;  %v431_v28 = vmul.f32 %v1544_v20, %v1497_v62 }
 0x135   : > { %v1510_v5 = vsel %vm1458_vm9, %v362_v63, %v340_v56  ;;  %v364_v6 = vmax.f32 %v346_v0, 0.0  ;;  %v1514_v7 = vsel %vm1458_vm9, %v367_v1, %v355_v57 }
 0x136   : > { %v428_v10 = vmul.f32 %v1493_v59, %v1510_v5  ;;  %551 = vst [vmem:[#allocation3 + $0x8] sm:$0xff] %v1510_v5  ;;  %v351_v12 = vpop.f32.mrf.mxu2 }
 0x137   : > { %v1530_v13 = vsel %vm1458_vm9, %v364_v6, %v346_v0  ;;  %556 = vst [vmem:[#allocation3 + $0x30] sm:$0xff] %v1514_v7  ;;  %v352_v15 = vadd.f32 %v1452_v26, %v351_v12 }
 0x138   : > { %v435_v17 = vadd.f32 %v428_v10, %v427_v9  ;;  %553 = vst [vmem:[#allocation3 + $0x18] sm:$0xff] %v1530_v13  ;;  %v357_v18 = vpop.f32.mrf.mxu3  ;;  %v430_v23 = vmul.f32 %v1534_v14, %v1530_v13 }
 0x139   : > { %v366_v21 = vmax.f32 %v352_v15, 0.0  ;;  %v358_v22 = vadd.f32 %v1452_v26, %v357_v18 }
 0x13a   : > { %v436_v24 = vadd.f32 %v435_v17, %v429_v16 }
 0x13b   : > { %v1555_v25 = vsel %vm1458_vm9, %v366_v21, %v352_v15  ;;  %v368_v26 = vmax.f32 %v358_v22, 0.0 }
 0x13c   : > { %v437_v29 = vadd.f32 %v436_v24, %v430_v23  ;;  %555 = vst [vmem:[#allocation3 + $0x28] sm:$0xff] %v1555_v25  ;;  %v432_v34 = vmul.f32 %v1558_v27, %v1555_v25 }
 0x13d   : > { %v1573_v32 = vsel %vm1458_vm9, %v368_v26, %v358_v22 }
 0x13e   : > { %v438_v35 = vadd.f32 %v437_v29, %v431_v28  ;;  %557 = vst [vmem:[#allocation3 + $0x38] sm:$0xff] %v1573_v32 }
 0x13f   : > { %1037 = shalt.err (!%p1034_p4)  }
 0x140   : > { %795 = dma.vmem_to_hbm [thread:$0]  (%p810_p10), %s585_s5, 1024, %s587_s9, [#allocation8]  ;;  %v433_v33 = vmul.f32 %v1569_v31, %v1514_v7  ;;  %v439_v37 = vadd.f32 %v438_v35, %v432_v34  ;;  %v451_v38 = vsub.f32 1.0, %v450_v30  ;;  %v434_v39 = vmul.f32 %v1579_v36, %v1573_v32  ;;  %v525_v35 = vld [vmem:[#allocation5] sm:$0x1] }
 0x141   : > { %vm454_vm2 = vweird.f32 %v1468_v41  ;;  %vm455_vm3 = vweird.f32 %v1516_v8  ;;  %v460_v46 = vand.u32 2147483648, %v1468_v41  ;;  %v458_v50 = vand.u32 2147483647, %v1468_v41  ;;  %s1605_s15 = spop %782  ;;  %s528_s14 = smul.f32 %s1349_s6, %s422_s8 }
 0x142   : > { %v440_v40 = vadd.f32 %v439_v37, %v433_v33  ;;  %v452_v44 = vmul.f32 %v1516_v8, %v451_v38  ;;  %vm456_vm4 = vmor %vm454_vm2, %vm455_vm3  ;;  %s520_s13 = smul.f32 %s1605_s15, %s1349_s6 }
 0x143   : > { %v461_v52 = vor.u32 1.1754944e-38, %v460_v46  ;;  %vm459_vm5 = vcmp.eq.f32.partialorder %v458_v50, 8.507059e+37  ;;  %s545_s30 = smul.f32 %s1605_s15, %s528_s14 }
 0x144   : > { %v441_v43 = vadd.f32 %v440_v40, %v434_v39  ;;  %v453_v49 = vadd.f32 %v1516_v8, %v452_v44  ;;  %v521_v11 = vstv %s520_s13 }
 0x146   : > { %v442_v45 = vrot.slane %v441_v43, 4  ;;  %v457_v55 = vsel %vm456_vm4, %v1516_v8, %v453_v49  ;;  %v502_v8 = vld [vmem:[#allocation4] sm:$0x1] }
 0x147   : > { %v462_v57 = vsel %vm459_vm5, %v461_v52, %v457_v55 }
 0x148   : > { %v443_v48 = vadd.f32 %v442_v45, %v441_v43 }
 0x14a   : > { %v444_v51 = vrot.slane %v443_v48, 2 }
 0x14c   : > { %v445_v53 = vadd.f32 %v444_v51, %v443_v48 }
 0x14e   : > { %v446_v56 = vrot.slane %v445_v53, 1 }
 0x150   : > { %v447_v58 = vadd.f32 %v446_v56, %v445_v53 }
 0x152   : > { %v463_v60 = vmul.f32 %v462_v57, %v447_v58 }
 0x154   : > { %v464_v61 = vsub.f32 %v1472_v42, %v463_v60  ;;  %v465_v63 = vsub.f32 %v1510_v5, %v463_v60  ;;  %v466_v41 = vsub.f32 %v1478_v47, %v463_v60  ;;  %v467_v0 = vsub.f32 %v1530_v13, %v463_v60 }
 0x155   : > { %v468_v1 = vsub.f32 %v1497_v62, %v463_v60  ;;  %v469_v9 = vsub.f32 %v1555_v25, %v463_v60  ;;  %v470_v47 = vsub.f32 %v1514_v7, %v463_v60  ;;  %v503_v15 = vsub.f32 %v463_v60, %v502_v8 }
 0x156   : > { %v472_v2 = vmul.f32 %v1487_v54, %v464_v61  ;;  %v473_v3 = vmul.f32 %v1493_v59, %v465_v63  ;;  %v474_v6 = vmul.f32 %v1506_v4, %v466_v41  ;;  %v475_v42 = vmul.f32 %v1534_v14, %v467_v0 }
 0x157   : > { %v476_v12 = vmul.f32 %v1544_v20, %v468_v1  ;;  %v471_v54 = vsub.f32 %v1573_v32, %v463_v60  ;;  %v477_v59 = vmul.f32 %v1558_v27, %v469_v9  ;;  %v522_v17 = vmul.f32 %v521_v11, %v503_v15 }
 0x158   : > { %v480_v10 = vmul.f32 %v472_v2, %v472_v2  ;;  %v481_v5 = vmul.f32 %v473_v3, %v473_v3  ;;  %v482_v13 = vmul.f32 %v474_v6, %v474_v6  ;;  %v483_v4 = vmul.f32 %v475_v42, %v475_v42 }
 0x159   : > { %v478_v14 = vmul.f32 %v1569_v31, %v470_v47  ;;  %v484_v18 = vmul.f32 %v476_v12, %v476_v12  ;;  %v523_v19 = vadd.f32 %v522_v17, %v502_v8  ;;  %v479_v20 = vmul.f32 %v1579_v36, %v471_v54 }
 0x15a   : > { %v488_v62 = vadd.f32 %v481_v5, %v480_v10  ;;  %v485_v21 = vmul.f32 %v477_v59, %v477_v59  ;;  %v527_v34 = vmul.f32 %v503_v15, %v503_v15  ;;  %v546_v36 = vstv %s545_s30 }
 0x15b   : > { %524 = vst [vmem:[#allocation4] sm:$0x1] %v523_v19  ;;  %v486_v23 = vmul.f32 %v478_v14, %v478_v14  ;;  %v487_v25 = vmul.f32 %v479_v20, %v479_v20 }
 0x15c   : > { %v489_v16 = vadd.f32 %v488_v62, %v482_v13  ;;  %v547_v38 = vmul.f32 %v546_v36, %v527_v34 }
 0x15e   : > { %v490_v7 = vadd.f32 %v489_v16, %v483_v4 }
 0x160   : > { %v491_v22 = vadd.f32 %v490_v7, %v484_v18 }
 0x162   : > { %v492_v24 = vadd.f32 %v491_v22, %v485_v21 }
 0x164   : > { %v493_v27 = vadd.f32 %v492_v24, %v486_v23 }
 0x166   : > { %v494_v26 = vadd.f32 %v493_v27, %v487_v25 }
 0x168   : > { %v495_v28 = vrot.slane %v494_v26, 4 }
 0x16a   : > { %v496_v29 = vadd.f32 %v495_v28, %v494_v26 }
 0x16c   : > { %v497_v30 = vrot.slane %v496_v29, 2 }
 0x16e   : > { %v498_v31 = vadd.f32 %v497_v30, %v496_v29 }
 0x170   : > { %v499_v32 = vrot.slane %v498_v31, 1 }
 0x172   : > { %v500_v33 = vadd.f32 %v499_v32, %v498_v31 }
 0x174   : > { %v526_v37 = vadd.f32 %v525_v35, %v500_v33 }
 0x176   : > { %v548_v39 = vadd.f32 %v547_v38, %v526_v37 }
 0x178   : > { %549 = vst [vmem:[#allocation5] sm:$0x1] %v548_v39 }
 0x179   : > { %1115 = dma.done.wait (%p810_p10), [#allocation8], 1024 }
 0x17a   : > { %1117 = vsyncadd (%p810_p10), [#allocation8], 4294966272  ;;  %p811_p5 = scmp.eq.s32.totalorder %s1140_s19, 5  ;;  %s597_s25 = scalar_lea.hbm %s1681_s3, %s1290_s1 }
 0x17b   : > { %s607_s28 = sshll.u32 %s597_s25, 4  ;;  %s1058_s23 = scalar_lea.hbm %s1681_s3, 256  ;;  %s608_s28 = int_to_ptr.hbm [resolvable:$true] %s607_s28 }
 0x17c   : > { %s1052_s26 = sshra.s32 %s608_s28, 4  ;;  %s1053_s26 = int_to_ptr.hbm [resolvable:$true] %s1052_s26 }
 0x17d   : > { %s1054_s29 = scalar_lea.hbm %s1053_s26, 64  ;;  %p1059_p8 = scmp.lt.s32.totalorder %s1053_s26, %s1681_s3 }
 0x17e   : > { %p1055_p6 = scmp.ne.s32.totalorder %s1053_s26, %s1054_s29  ;;  %p1060_p9 = scmp.lt.s32.totalorder %s1058_s23, %s1054_s29 }
 0x180   : > { %p1056_p7 = pnand %p1055_p6, %p811_p5  ;;  %p1061_p10 = por %p1060_p9, %p1059_p8 }
 0x182   : > { %p1057_p13 = pneg %p1056_p7 }
 0x184   : > { %p1062_p11 = pnand %p1061_p10, %p1057_p13 }
 0x186   : > { %1065 = shalt.err (!%p1062_p11)  }
 0x187   : > { %798 = dma.vmem_to_hbm [thread:$0]  (%p811_p5), %s585_s5, 1024, %s608_s28, [#allocation8] }
 0x188   : > { %1119 = dma.done.wait (%p811_p5), [#allocation8], 1024 }
 0x189   : > { %1121 = vsyncadd (%p811_p5), [#allocation8], 4294966272 }
 0x18a PF: > { %s21_s22 = sadd.s32 1, %s1152_s22   ;;  %s1697_s1 = sld [smem:[#allocation29_spill]] }
 0x18b   : > { %p18_p12 = scmp.ge.s32.totalorder %s21_s22, 25   ;;  %s1698_s15 = smov %s1128_s16 }
 0x18c   : > { %s1699_s16 = smov %s1132_s17  ;;  %s1700_s17 = smov %s1251_s7 }
 0x18d   : > { %s1701_s18 = smov %s1144_s20  ;;  %s1702_s19 = smov %s1148_s21 }
 0x18e   : > { %s1703_s20 = smov %s1706_s24  ;;  %20 = sbr.rel (!%p18_p12) target bundleno = 9 (0x9), region = 105 }
 0x190   : > { %s1704_s21 = smov %s1697_s1 }
 0x193   :  { %614 = vsyncpa [#allocation10], 1 }
 0x194   :  { %616 = vsyncpa [#allocation10 + $0x1], 1 }
 0x195   :  { %617 = vsyncpa [#allocation12], 1 }
 0x196   :  { %619 = vsyncpa [#allocation12 + $0x1], 1 }
 0x197   :  { %620 = vsyncmov [#allocation8] }
 0x19a   :  { %s621_s5 = vpop.sfrf %620 }
 0x19b   :  { %p732_p0 = scmp.ne.s32.totalorder %s621_s5, 0 }
 0x19d   :  { %625 = shalt.err (%p732_p0)  }

</bundles_post_ra>
